<compile_context>
chip_gen: v5e
topology: v5e:2x2
jax: 0.10.0
libtpu: 0.0.40
codegen_flags: <defaults>
</compile_context>

<pallas_src>
import math

import jax
import jax.numpy as jnp
from jax import lax
from jax.experimental import pallas as pl
from jax.experimental.pallas import tpu as pltpu


def _round_up(x, m):
    return ((x + m - 1) // m) * m


def _pick_tile(length, candidates):
    """Pick the tile size minimizing sequence padding (tie-break: larger tile)."""
    length8 = _round_up(max(length, 1), 8)
    best_key, best_t = None, None
    for cand in candidates:
        t = min(_round_up(cand, 8), length8)
        padded = _round_up(length, t)
        key = (padded, -t)
        if best_key is None or key < best_key:
            best_key, best_t = key, t
    return best_t


def _pick_group(bh, small_seq):
    """Heads batched per grid step.  Only for tiny-sequence workloads; keep the
    leading 'parallel' axis >= 2 when possible (v7x has 2 TensorCores)."""
    if not small_seq or bh <= 1:
        return 1
    best = 1
    for g in range(1, bh + 1):
        if bh % g == 0 and g <= 16 and bh // g >= 2:
            best = g
    return best


def _vmem_limit_bytes():
    try:
        cap = int(pltpu.get_tpu_info().vmem_capacity_bytes)
    except Exception:
        cap = 64 * 1024 * 1024  # conservative default (v7x-sized)
    # 128 MiB parts (v5e/v6e) -> 96 MiB scoped; 64 MiB parts (v7x) -> 48 MiB.
    return min(96 * 1024 * 1024, (cap * 3) // 4)


def _make_flash_kernel(scale, lk_actual, tk, num_k_tiles, mask_keys, compute_dtype):
    last = num_k_tiles - 1

    def kernel(q_ref, k_ref, v_ref, o_ref, m_scr, l_scr, acc_scr):
        ki = pl.program_id(2)

        @pl.when(ki == 0)
        def _init():
            m_scr[...] = jnp.full(m_scr.shape, -jnp.inf, dtype=jnp.float32)
            l_scr[...] = jnp.zeros(l_scr.shape, dtype=jnp.float32)
            acc_scr[...] = jnp.zeros(acc_scr.shape, dtype=jnp.float32)

        q = q_ref[...]  # [G, TQ, Dk]  (native dtype straight to the MXU)
        k = k_ref[...]  # [G, TK, Dk]
        v = v_ref[...]  # [G, TK, Dv]
        if compute_dtype is not None:
            q = q.astype(compute_dtype)
            k = k.astype(compute_dtype)
            v = v.astype(compute_dtype)

        # Fold 1/sqrt(d_k) into the small Q tile: removes a [G,TQ,TK] f32
        # multiply from every ki iteration.
        q = q * jnp.asarray(scale, dtype=q.dtype)

        # scores = Q @ K^T, contracting the trailing dim of both operands
        # (no in-kernel K transpose / XLU traffic); f32 accumulation.
        s = jnp.einsum("gqd,gkd->gqk", q, k,
                       preferred_element_type=jnp.float32)  # [G, TQ, TK]

        def update(s_blk):
            m_prev = m_scr[...]
            m_new = jnp.maximum(m_prev, jnp.max(s_blk, axis=-1, keepdims=True))
            alpha = jnp.exp(m_prev - m_new)
            p = jnp.exp(s_blk - m_new)
            l_scr[...] = alpha * l_scr[...] + jnp.sum(p, axis=-1, keepdims=True)
            acc_scr[...] = alpha * acc_scr[...] + jnp.einsum(
                "gqk,gkd->gqd", p.astype(v.dtype), v,
                preferred_element_type=jnp.float32)
            m_scr[...] = m_new

        if mask_keys:
            # Only the final K tile can contain zero-padded keys (lkp-Lk < TK),
            # so the mask (iota + compare + select) is gated to that step only.
            @pl.when(ki != last)
            def _unmasked():
                update(s)

            @pl.when(ki == last)
            def _masked():
                kpos = last * tk + lax.broadcasted_iota(jnp.int32, s.shape, 2)
                update(jnp.where(kpos < lk_actual, s, jnp.float32(-1e30)))
        else:
            update(s)

        @pl.when(ki == last)
        def _finalize():
            # Exact divide: runs once per Q tile on a tiny [G, TQ, 1] column.
            inv_l = 1.0 / l_scr[...]
            o_ref[...] = (acc_scr[...] * inv_l).astype(o_ref.dtype)

    return kernel


def scaled_dot_product_attention(Q, K, V, *, tq=None, tk=None,
                                 heads_per_step=None, use_bf16_matmul=False):
    """Q: [B,H,Lq,Dk], K: [B,H,Lk,Dk], V: [B,H,Lk,Dv] -> [B,H,Lq,Dv]."""
    B, H, Lq, Dk = Q.shape
    Lk = K.shape[2]
    Dv = V.shape[-1]
    BH = B * H

    q = Q.reshape(BH, Lq, Dk)
    k = K.reshape(BH, Lk, Dk)
    v = V.reshape(BH, Lk, Dv)

    # Sequence tiles chosen to minimize padding; head dims are used at their
    # full extent (no padding to 128).
    TQ = tq if tq is not None else _pick_tile(Lq, (512, 256, 128))
    TK = tk if tk is not None else _pick_tile(Lk, (1024, 512, 256, 128))
    lqp = _round_up(Lq, TQ)
    lkp = _round_up(Lk, TK)

    small_seq = (Lq <= 128) and (Lk <= 128)
    G = heads_per_step if heads_per_step is not None else _pick_group(BH, small_seq)
    if BH % G != 0:
        G = 1

    def pad_rows(x, rows):
        cur = x.shape[1]
        if cur == rows:
            return x
        return jnp.pad(x, ((0, 0), (0, rows - cur), (0, 0)))

    qp = pad_rows(q, lqp)
    kp = pad_rows(k, lkp)  # zero-padded keys are masked in-kernel (last tile only)
    vp = pad_rows(v, lkp)

    mask_keys = lkp != Lk
    scale = 1.0 / math.sqrt(Dk)
    num_k_tiles = lkp // TK
    compute_dtype = (jnp.bfloat16
                     if (use_bf16_matmul and Q.dtype == jnp.float32) else None)
    kernel = _make_flash_kernel(scale, Lk, TK, num_k_tiles, mask_keys,
                                compute_dtype)

    grid = (BH // G, lqp // TQ, num_k_tiles)

    itemsize = jnp.dtype(Q.dtype).itemsize
    cost = pl.CostEstimate(
        flops=2 * BH * lqp * lkp * (Dk + Dv),
        transcendentals=BH * lqp * lkp,
        bytes_accessed=(qp.size + kp.size + vp.size + BH * lqp * Dv) * itemsize,
    )

    out = pl.pallas_call(
        kernel,
        out_shape=jax.ShapeDtypeStruct((BH, lqp, Dv), Q.dtype),
        grid_spec=pltpu.PrefetchScalarGridSpec(
            num_scalar_prefetch=0,
            grid=grid,
            in_specs=[
                pl.BlockSpec((G, TQ, Dk), lambda g, qi, ki: (g, qi, 0)),
                pl.BlockSpec((G, TK, Dk), lambda g, qi, ki: (g, ki, 0)),
                pl.BlockSpec((G, TK, Dv), lambda g, qi, ki: (g, ki, 0)),
            ],
            out_specs=pl.BlockSpec((G, TQ, Dv), lambda g, qi, ki: (g, qi, 0)),
            scratch_shapes=[
                pltpu.VMEM((G, TQ, 1), jnp.float32),    # running max  m
                pltpu.VMEM((G, TQ, 1), jnp.float32),    # running sum  l
                pltpu.VMEM((G, TQ, Dv), jnp.float32),   # f32 output accumulator
            ],
        ),
        compiler_params=pltpu.CompilerParams(
            dimension_semantics=("parallel", "parallel", "arbitrary"),
            vmem_limit_bytes=_vmem_limit_bytes(),
        ),
        cost_estimate=cost,
    )(qp, kp, vp)

    if lqp != Lq:
        out = out[:, :Lq, :]
    return out.reshape(B, H, Lq, Dv)


def _reference(Q, K, V):
    dk = Q.shape[-1]
    scores = jnp.einsum("bhqd,bhkd->bhqk", Q, K) / jnp.sqrt(jnp.float32(dk))
    attn = jax.nn.softmax(scores, axis=-1)
    return jnp.einsum("bhqk,bhkv->bhqv", attn, V)


if __name__ == "__main__":
    key = jax.random.PRNGKey(0)
    kq, kk, kv = jax.random.split(key, 3)

    B, H, Lq, Lk, Dk, Dv = 2, 4, 8, 8, 32, 32
    Q = jax.random.normal(kq, (B, H, Lq, Dk), dtype=jnp.float32)
    K = jax.random.normal(kk, (B, H, Lk, Dk), dtype=jnp.float32)
    V = jax.random.normal(kv, (B, H, Lk, Dv), dtype=jnp.float32)

    out = scaled_dot_product_attention(Q, K, V)
    jax.block_until_ready(out)

    ref = _reference(Q, K, V)
    assert out.shape == (B, H, Lq, Dv)
    assert jnp.allclose(out, ref, atol=1e-4, rtol=1e-4), "mismatch vs reference"

    print("KERNEL_OK")
</pallas_src>

<mosaic_0001>
module attributes {stable_mosaic.version = 11 : i64} {
  func.func @kernel(%arg0: i32, %arg1: i32, %arg2: i32, %arg3: memref<4x8x32xf32, #tpu.memory_space<vmem>>, %arg4: memref<4x8x32xf32, #tpu.memory_space<vmem>>, %arg5: memref<4x8x32xf32, #tpu.memory_space<vmem>>, %arg6: memref<4x8x32xf32, #tpu.memory_space<vmem>>, %arg7: memref<4x8x1xf32, #tpu.memory_space<vmem>>, %arg8: memref<4x8x1xf32, #tpu.memory_space<vmem>>, %arg9: memref<4x8x32xf32, #tpu.memory_space<vmem>>) attributes {dimension_semantics = [#tpu.dimension_semantics<parallel>, #tpu.dimension_semantics<parallel>, #tpu.dimension_semantics<arbitrary>], iteration_bounds = array<i64: 2, 1, 1>, scalar_prefetch = 0 : i64, scratch_operands = 3 : i64, tpu.core_type = #tpu.core_type<tc>, window_params = [{transform_indices = @transform_0, window_bounds = array<i64: 4, 8, 32>}, {transform_indices = @transform_1, window_bounds = array<i64: 4, 8, 32>}, {transform_indices = @transform_2, window_bounds = array<i64: 4, 8, 32>}, {transform_indices = @transform_3, window_bounds = array<i64: 4, 8, 32>}]} {
    %c0_i32 = arith.constant 0 : i32
    %0 = arith.cmpi eq, %arg2, %c0_i32 : i32
    %1 = arith.extui %0 : i1 to i32
    %c0_i32_0 = arith.constant 0 : i32
    %2 = arith.cmpi ne, %1, %c0_i32_0 : i32
    scf.if %2 {
      %cst_33 = arith.constant 0xFF800000 : f32
      %34 = vector.broadcast %cst_33 : f32 to vector<4x8x1xf32>
      %c0_34 = arith.constant 0 : index
      %c0_35 = arith.constant 0 : index
      %c0_36 = arith.constant 0 : index
      %35 = vector.load %arg7[%c0_34, %c0_35, %c0_36] : memref<4x8x1xf32, #tpu.memory_space<vmem>>, vector<4x8x1xf32>
      tpu.vector_store %arg7[%c0_34, %c0_35, %c0_36], %34 {strides = array<i32>} : memref<4x8x1xf32, #tpu.memory_space<vmem>>, vector<4x8x1xf32>,
      %cst_37 = arith.constant 0.000000e+00 : f32
      %36 = vector.broadcast %cst_37 : f32 to vector<4x8x1xf32>
      %c0_38 = arith.constant 0 : index
      %c0_39 = arith.constant 0 : index
      %c0_40 = arith.constant 0 : index
      %37 = vector.load %arg8[%c0_38, %c0_39, %c0_40] : memref<4x8x1xf32, #tpu.memory_space<vmem>>, vector<4x8x1xf32>
      tpu.vector_store %arg8[%c0_38, %c0_39, %c0_40], %36 {strides = array<i32>} : memref<4x8x1xf32, #tpu.memory_space<vmem>>, vector<4x8x1xf32>,
      %cst_41 = arith.constant 0.000000e+00 : f32
      %38 = vector.broadcast %cst_41 : f32 to vector<4x8x32xf32>
      %c0_42 = arith.constant 0 : index
      %c0_43 = arith.constant 0 : index
      %c0_44 = arith.constant 0 : index
      %39 = vector.load %arg9[%c0_42, %c0_43, %c0_44] : memref<4x8x32xf32, #tpu.memory_space<vmem>>, vector<4x8x32xf32>
      tpu.vector_store %arg9[%c0_42, %c0_43, %c0_44], %38 {strides = array<i32>} : memref<4x8x32xf32, #tpu.memory_space<vmem>>, vector<4x8x32xf32>,
    } else {
    }
    %c0 = arith.constant 0 : index
    %c0_1 = arith.constant 0 : index
    %c0_2 = arith.constant 0 : index
    %3 = vector.load %arg3[%c0, %c0_1, %c0_2] : memref<4x8x32xf32, #tpu.memory_space<vmem>>, vector<4x8x32xf32>
    %c0_3 = arith.constant 0 : index
    %c0_4 = arith.constant 0 : index
    %c0_5 = arith.constant 0 : index
    %4 = vector.load %arg4[%c0_3, %c0_4, %c0_5] : memref<4x8x32xf32, #tpu.memory_space<vmem>>, vector<4x8x32xf32>
    %c0_6 = arith.constant 0 : index
    %c0_7 = arith.constant 0 : index
    %c0_8 = arith.constant 0 : index
    %5 = vector.load %arg5[%c0_6, %c0_7, %c0_8] : memref<4x8x32xf32, #tpu.memory_space<vmem>>, vector<4x8x32xf32>
    %cst = arith.constant 0.176776692 : f32
    %6 = vector.broadcast %cst : f32 to vector<4x8x32xf32>
    %7 = arith.mulf %3, %6 : vector<4x8x32xf32>
    "tpu.trace_start"() <{level = 10 : i32, message = "gqd,gkd->gqk"}> : () -> ()
    %cst_9 = arith.constant dense<0.000000e+00> : vector<4x8x8xf32>
    %8 = tpu.matmul %7, %4, %cst_9 {dimension_numbers = #tpu.dot_dimension_numbers<[2], [2], [1], [1], [0, 0, 0, 1, 1, 1], [0], [0]>} : vector<4x8x32xf32>, vector<4x8x32xf32>, vector<4x8x8xf32> -> vector<4x8x8xf32>
    "tpu.trace_stop"() : () -> ()
    %c0_10 = arith.constant 0 : index
    %c0_11 = arith.constant 0 : index
    %c0_12 = arith.constant 0 : index
    %9 = vector.load %arg7[%c0_10, %c0_11, %c0_12] : memref<4x8x1xf32, #tpu.memory_space<vmem>>, vector<4x8x1xf32>
    %cst_13 = arith.constant dense<0xFF800000> : vector<4x8xf32>
    %10 = vector.multi_reduction <maximumf>, %8, %cst_13 [2] : vector<4x8x8xf32> to vector<4x8xf32>
    %11 = vector.shape_cast %10 : vector<4x8xf32> to vector<4x8x1xf32>
    %12 = arith.maximumf %9, %11 : vector<4x8x1xf32>
    %13 = arith.subf %9, %12 : vector<4x8x1xf32>
    %14 = math.exp %13 : vector<4x8x1xf32>
    %15 = vector.broadcast %12 : vector<4x8x1xf32> to vector<4x8x8xf32>
    %16 = arith.subf %8, %15 : vector<4x8x8xf32>
    %17 = math.exp %16 : vector<4x8x8xf32>
    %c0_14 = arith.constant 0 : index
    %c0_15 = arith.constant 0 : index
    %c0_16 = arith.constant 0 : index
    %18 = vector.load %arg8[%c0_14, %c0_15, %c0_16] : memref<4x8x1xf32, #tpu.memory_space<vmem>>, vector<4x8x1xf32>
    %19 = arith.mulf %14, %18 : vector<4x8x1xf32>
    %cst_17 = arith.constant dense<0.000000e+00> : vector<4x8xf32>
    %20 = vector.multi_reduction <add>, %17, %cst_17 [2] : vector<4x8x8xf32> to vector<4x8xf32>
    %21 = vector.shape_cast %20 : vector<4x8xf32> to vector<4x8x1xf32>
    %22 = arith.addf %19, %21 : vector<4x8x1xf32>
    %c0_18 = arith.constant 0 : index
    %c0_19 = arith.constant 0 : index
    %c0_20 = arith.constant 0 : index
    %23 = vector.load %arg8[%c0_18, %c0_19, %c0_20] : memref<4x8x1xf32, #tpu.memory_space<vmem>>, vector<4x8x1xf32>
    tpu.vector_store %arg8[%c0_18, %c0_19, %c0_20], %22 {strides = array<i32>} : memref<4x8x1xf32, #tpu.memory_space<vmem>>, vector<4x8x1xf32>,
    %c0_21 = arith.constant 0 : index
    %c0_22 = arith.constant 0 : index
    %c0_23 = arith.constant 0 : index
    %24 = vector.load %arg9[%c0_21, %c0_22, %c0_23] : memref<4x8x32xf32, #tpu.memory_space<vmem>>, vector<4x8x32xf32>
    %25 = vector.broadcast %14 : vector<4x8x1xf32> to vector<4x8x32xf32>
    %26 = arith.mulf %25, %24 : vector<4x8x32xf32>
    "tpu.trace_start"() <{level = 10 : i32, message = "gqk,gkd->gqd"}> : () -> ()
    %cst_24 = arith.constant dense<0.000000e+00> : vector<4x8x32xf32>
    %27 = tpu.matmul %17, %5, %cst_24 {dimension_numbers = #tpu.dot_dimension_numbers<[2], [1], [1], [2], [0, 0, 0, 1, 1, 2], [0], [0]>} : vector<4x8x8xf32>, vector<4x8x32xf32>, vector<4x8x32xf32> -> vector<4x8x32xf32>
    "tpu.trace_stop"() : () -> ()
    %28 = arith.addf %26, %27 : vector<4x8x32xf32>
    %c0_25 = arith.constant 0 : index
    %c0_26 = arith.constant 0 : index
    %c0_27 = arith.constant 0 : index
    %29 = vector.load %arg9[%c0_25, %c0_26, %c0_27] : memref<4x8x32xf32, #tpu.memory_space<vmem>>, vector<4x8x32xf32>
    tpu.vector_store %arg9[%c0_25, %c0_26, %c0_27], %28 {strides = array<i32>} : memref<4x8x32xf32, #tpu.memory_space<vmem>>, vector<4x8x32xf32>,
    %c0_28 = arith.constant 0 : index
    %c0_29 = arith.constant 0 : index
    %c0_30 = arith.constant 0 : index
    %30 = vector.load %arg7[%c0_28, %c0_29, %c0_30] : memref<4x8x1xf32, #tpu.memory_space<vmem>>, vector<4x8x1xf32>
    tpu.vector_store %arg7[%c0_28, %c0_29, %c0_30], %12 {strides = array<i32>} : memref<4x8x1xf32, #tpu.memory_space<vmem>>, vector<4x8x1xf32>,
    %c0_i32_31 = arith.constant 0 : i32
    %31 = arith.cmpi eq, %arg2, %c0_i32_31 : i32
    %32 = arith.extui %31 : i1 to i32
    %c0_i32_32 = arith.constant 0 : i32
    %33 = arith.cmpi ne, %32, %c0_i32_32 : i32
    scf.if %33 {
      %c0_33 = arith.constant 0 : index
      %c0_34 = arith.constant 0 : index
      %c0_35 = arith.constant 0 : index
      %34 = vector.load %arg8[%c0_33, %c0_34, %c0_35] : memref<4x8x1xf32, #tpu.memory_space<vmem>>, vector<4x8x1xf32>
      %cst_36 = arith.constant 1.000000e+00 : f32
      %35 = vector.broadcast %cst_36 : f32 to vector<4x8x1xf32>
      %36 = arith.divf %35, %34 : vector<4x8x1xf32>
      %c0_37 = arith.constant 0 : index
      %c0_38 = arith.constant 0 : index
      %c0_39 = arith.constant 0 : index
      %37 = vector.load %arg9[%c0_37, %c0_38, %c0_39] : memref<4x8x32xf32, #tpu.memory_space<vmem>>, vector<4x8x32xf32>
      %38 = vector.broadcast %36 : vector<4x8x1xf32> to vector<4x8x32xf32>
      %39 = arith.mulf %37, %38 : vector<4x8x32xf32>
      %c0_40 = arith.constant 0 : index
      %c0_41 = arith.constant 0 : index
      %c0_42 = arith.constant 0 : index
      %40 = vector.load %arg6[%c0_40, %c0_41, %c0_42] : memref<4x8x32xf32, #tpu.memory_space<vmem>>, vector<4x8x32xf32>
      tpu.vector_store %arg6[%c0_40, %c0_41, %c0_42], %39 {strides = array<i32>} : memref<4x8x32xf32, #tpu.memory_space<vmem>>, vector<4x8x32xf32>,
    } else {
    }
    return
  }
  func.func @transform_0(%arg0: i32, %arg1: i32, %arg2: i32) -> (i32, i32, i32) {
    %c0_i32 = arith.constant 0 : i32
    %c0_i32_0 = arith.constant 0 : i32
    return %arg0, %arg1, %c0_i32 : i32, i32, i32
  }
  func.func @transform_1(%arg0: i32, %arg1: i32, %arg2: i32) -> (i32, i32, i32) {
    %c0_i32 = arith.constant 0 : i32
    %c0_i32_0 = arith.constant 0 : i32
    return %arg0, %arg2, %c0_i32 : i32, i32, i32
  }
  func.func @transform_2(%arg0: i32, %arg1: i32, %arg2: i32) -> (i32, i32, i32) {
    %c0_i32 = arith.constant 0 : i32
    %c0_i32_0 = arith.constant 0 : i32
    return %arg0, %arg2, %c0_i32 : i32, i32, i32
  }
  func.func @transform_3(%arg0: i32, %arg1: i32, %arg2: i32) -> (i32, i32, i32) {
    %c0_i32 = arith.constant 0 : i32
    %c0_i32_0 = arith.constant 0 : i32
    return %arg0, %arg1, %c0_i32 : i32, i32, i32
  }
}

</mosaic_0001>

<bundles_post_ra>
// kernel: tpu_custom_call.1
= control target key start
LH: loop header
LB: loop body
LE: loop exit
PB: predicated region body
PF: predicated region fallthrough
CT: control target
= control target key end

     0   :  { %s1504_s0 = inlined_call_operand.hbm [shape: f32[8,8,32], index: 0, kind: input, shape index: {}]   ;;  %s1505_s1 = inlined_call_operand.hbm [shape: f32[8,8,32], index: 1, kind: input, shape index: {}]   ;;  %s1506_s2 = inlined_call_operand.hbm [shape: f32[8,8,32], index: 2, kind: input, shape index: {}]   ;;  %s1507_s3 = inlined_call_operand.hbm [shape: f32[8,8,32], index: 3, kind: output, shape index: {}]  }
   0x1   :  { %1513 = sst [smem:[#allocation20_spill]] %s1505_s1 }
   0x2   :  { %8 = vsyncpa [#allocation6], 0 }
   0x3   :  { %10 = vsyncpa [#allocation6 + $0x1], 0 }
   0x4   :  { %11 = vsyncpa [#allocation9], 0 }
   0x5   :  { %13 = vsyncpa [#allocation9 + $0x1], 0 }
   0x6   :  { %14 = vsyncpa [#allocation7], 0 }
   0x7   :  { %16 = vsyncpa [#allocation7 + $0x1], 0  ;;  %s1272_s12 = smov 0   ;;  %s1274_s13 = smov 0  }
   0x8   :  { %s1276_s14 = smov 0   ;;  %s1278_s15 = smov 0  }
   0x9   :  { %s1280_s16 = smov 0   ;;  %s1282_s17 = smov 0  }
   0xa LB: > { %1514 = sst [smem:[#allocation15_spill]] %s1231_s14  ;;  %s1303_s18 = sadd.s32 4294967295, %s1243_s17   ;;  %s1243_s17 = sphi %s1282_s17, %s22_s17   ;;  %s1239_s16 = sphi %s1280_s16, %s1530_s16   ;;  %s1235_s15 = sphi %s1278_s15, %s1529_s15   ;;  %s1231_s14 = sphi %s1276_s14, %s1533_s14   ;;  %s1227_s13 = sphi %s1274_s13, %s1532_s13   ;;  %s1223_s12 = sphi %s1272_s12, %s1531_s12  }
   0xb   : > { %1515 = sst [smem:[#allocation16_spill]] %s1239_s16  ;;  %s923_s19 = sadd.s32 4294967294, %s1243_s17  }
   0xc   : > { %1516 = sst [smem:[#allocation17_spill]] %s1243_s17  ;;  %s41_s20 = sadd.s32 1, %s1239_s16 }
   0xd   : > { %s50_s21 = sadd.s32 1, %s1231_s14  ;;  %p43_p0 = scmp.ge.s32.totalorder %s41_s20, 2 }
   0xe   : > { %p57_p1 = scmp.ne.s32.totalorder %s1231_s14, %s1227_s13  ;;  %p58_p2 = scmp.eq.s32.totalorder %s1243_s17, 0 }
   0xf   : > { %p63_p3 = scmp.ne.s32.totalorder %s1227_s13, %s1223_s12  ;;  %s1535_s20 = smov (%p43_p0, %s41_s20), 0 }
  0x10   : > { %1517 = sst [smem:[#allocation18_spill]] %s1535_s20  ;;  %p1315_p4 = por %p58_p2, %p57_p1 }
  0x11   : > { %p64_p5 = scmp.eq.s32.totalorder %s1303_s18, 0  ;;  %s45_s23 = ssub.s32 %s1239_s16, %s1535_s20 }
  0x12   : > { %p145_p6 = scmp.eq.s32.totalorder %s1303_s18, 1  ;;  %p48_p7 = scmp.eq.s32.totalorder %s45_s23, 0 }
  0x13   : > { %p1323_p8 = por %p64_p5, %p63_p3  ;;  %p151_p10 = scmp.eq.s32.totalorder %s923_s19, 1 }
  0x14   : > { %p1327_p9 = por %p145_p6, %p57_p1  ;;  %p925_p12 = scmp.ge.s32.totalorder %s1243_s17, 2 }
  0x15   : > { %s1332_s26 = scalar_select %p48_p7, %s1231_s14, %s50_s21  }
  0x16   : > { %p1334_p11 = por %p151_p10, %p63_p3  ;;  %p983_p13 = scmp.lt.s32.totalorder %s1243_s17, 2 }
  0x17   : > { %1521 = sst [smem:[#allocation19_spill]] %s1332_s26  ;;  %s171_s28 = sand.u32 1, %s1231_s14  }
  0x18   : > { %s1341_s29 = sshll.u32 %s171_s28, 5  ;;  %s957_s30 = sshll.u32 %s1239_s16, 5 }
  0x19   : > { %p1346_p0 = pnand %p983_p13, %p1315_p4  ;;  %s194_s5 = sand.u32 1, %s1243_s17  }
  0x1a   : > { %s1524_s1 = sld [smem:[#allocation20_spill]]  ;;  %s198_s10 = scalar_lea.vmem [#allocation8], %s1341_s29 }
  0x1b   : > { %s207_s11 = sshll.u32 %s198_s10, 4  ;;  %s195_s19 = scalar_lea.sflag [#allocation9], %s194_s5  ;;  %s208_s11 = int_to_ptr.vmem [resolvable:$true] %s207_s11 }
  0x1c   : > { %s1245_s21 = smov 128   ;;  %s1246_s22 = smov 8  }
  0x1d   : > { %p935_p1 = scmp.ge.s32.totalorder %s1243_s17, 1  ;;  %p238_p2 = scmp.lt.s32.totalorder %s1243_s17, 3 }
  0x1e   : > { %s172_s5 = scalar_lea.sflag [#allocation6], %s171_s28  ;;  %s227_s16 = scalar_lea.hbm %s1506_s2, %s957_s30 }
  0x1f   : > { %p1359_p3 = pnand %p935_p1, %p238_p2  ;;  %s228_s26 = sshll.u32 %s227_s16, 4  ;;  %s229_s26 = int_to_ptr.hbm [resolvable:$true] %s228_s26 }
  0x20   : > { %s204_s8 = scalar_lea.hbm %s1524_s1, %s957_s30  ;;  %s175_s1 = scalar_lea.vmem [#allocation5], %s1341_s29 }
  0x21   : > { %s205_s9 = sshll.u32 %s204_s8, 4  ;;  %s181_s8 = scalar_lea.hbm %s1504_s0, %s957_s30  ;;  %s206_s9 = int_to_ptr.hbm [resolvable:$true] %s205_s9 }
  0x22   : > { %975 = dma.hbm_to_vmem [thread:$0]  (!%p1346_p0), %s206_s9, 512, %s208_s11, %s195_s19, %s1245_s21, %s1245_s21, %s1246_s22  }
  0x23   : > { %s182_s10 = sshll.u32 %s181_s8, 4  ;;  %s184_s20 = sshll.u32 %s175_s1, 4  ;;  %s183_s10 = int_to_ptr.hbm [resolvable:$true] %s182_s10  ;;  %s185_s20 = int_to_ptr.vmem [resolvable:$true] %s184_s20 }
  0x24   : > { %972 = dma.hbm_to_vmem [thread:$0]  (!%p1346_p0), %s183_s10, 512, %s185_s20, %s172_s5, %s1245_s21, %s1245_s21, %s1246_s22  }
  0x25   : > { %s221_s14 = scalar_lea.vmem [#allocation10], %s1341_s29  ;;  %242 = sbr.rel (%p1359_p3) target bundleno = 686 (0x2ae), region = 32 }
  0x26   : > { %s230_s17 = sshll.u32 %s221_s14, 4  ;;  %s1378_s1 = sand.u32 (!%p1359_p3), 1, %s1227_s13   ;;  %s231_s17 = int_to_ptr.vmem [resolvable:$true] %s230_s17 }
  0x27   : > { %978 = dma.hbm_to_vmem [thread:$0]  (!%p1346_p0), %s229_s26, 512, %s231_s17, %s195_s19, %s1245_s21, %s1245_s21, %s1246_s22  }
  0x28   : > { %s1381_s20 = sshll.u32 (!%p1359_p3), %s1378_s1, 5  ;;  %s245_s28 = scalar_lea.sflag (!%p1359_p3), [#allocation6], %s1378_s1 }
  0x29   : > { %s248_s16 = scalar_lea.vmem (!%p1359_p3), [#allocation5], %s1381_s20 }
  0x2a   : > { %1210 = dma.done.wait (%p1323_p8), %s245_s28, 512  }
  0x2b   : > { %1212 = vsyncadd (%p1323_p8), %s245_s28, 4294966784  ;;  %s254_s14 = sand.u32 1, %s1303_s18   ;;  %s258_s26 = scalar_lea.vmem [#allocation8], %s1381_s20 }
  0x2c   : > { %s255_s17 = scalar_lea.sflag [#allocation9], %s254_s14 }
  0x2d   : > { %1214 = dma.done.wait (%p1323_p8), %s255_s17, 1024  }
  0x2e   : > { %1216 = vsyncadd (%p1323_p8), %s255_s17, 4294966272  ;;  %vm319_vm0 = vcmask 261120   ;;  %v328_v0 = vld [vmem:[%s258_s26] sm:$0xff]  ;;  %v330_v1 = vld [vmem:[%s258_s26 + $0x10] sm:$0xff]  ;;  %vm310_vm1 = vcmask 7168   ;;  %v1247_v12 = vmov -inf  }
  0x2f   : > { %v324_v2 = vld [vmem:[%s248_s16] sm:$0xff]  ;;  %940 = vmatpush.xpose.msk.msra.mxu0 %vm319_vm0, %v328_v0  ;;  %944 = vmatpush.xpose.msk.msra.mxu2 %vm319_vm0, %v330_v1  ;;  %v326_v4 = vld [vmem:[%s248_s16 + $0x10] sm:$0xff]  ;;  %v329_v5 = vld [vmem:[%s258_s26 + $0x8] sm:$0xff]  ;;  %311 = vst.msk [vmem:[#allocation2] sm:$0xff] %vm310_vm1, %v1247_v12  ;;  %vm449_vm2 = vcmask 64512   ;;  %v1248_v21 = vmov 0  }
  0x30   : > { %v336_v3 = vmul.f32 0.17677669, %v324_v2  ;;  %v331_v6 = vld [vmem:[%s258_s26 + $0x18] sm:$0xff]  ;;  %v338_v7 = vmul.f32 0.17677669, %v326_v4  ;;  %942 = vmatpush.xpose.msk.msra.mxu1 %vm319_vm0, %v329_v5  ;;  %v325_v8 = vld [vmem:[%s248_s16 + $0x8] sm:$0xff]  ;;  %1041 = vset.pattern.permute.xlu0 %v1248_v21 }
  0x31   : > { %946 = vmatpush.xpose.msk.msra.mxu3 %vm319_vm0, %v331_v6  ;;  %v327_v9 = vld [vmem:[%s248_s16 + $0x18] sm:$0xff]  ;;  %v337_v10 = vmul.f32 0.17677669, %v325_v8  ;;  %312 = vst.msk [vmem:[#allocation2 + $0x8] sm:$0xff] %vm310_vm1, %v1247_v12  ;;  %1040 = vset.pattern.permute.xlu2 %v1248_v21  ;;  %v1249_v22 = vmov 0.0   ;;  %s268_s18 = scalar_lea.vmem [#allocation10], %s1381_s20 }
  0x32   : > { %v339_v11 = vmul.f32 0.17677669, %v327_v9  ;;  %941 = vmatmul.msk.f32.vlgmr.msra.gmra.mxu0 %vm319_vm0, %v336_v3  ;;  %945 = vmatmul.msk.f32.vlgmr.msra.gmra.mxu2 %vm319_vm0, %v338_v7  ;;  %313 = vst.msk [vmem:[#allocation2 + $0x10] sm:$0xff] %vm310_vm1, %v1247_v12  ;;  %v334_v39 = vld [vmem:[%s268_s18 + $0x10] sm:$0xff]  ;;  %v335_v40 = vld [vmem:[%s268_s18 + $0x18] sm:$0xff]  ;;  %v332_v41 = vld [vmem:[%s268_s18] sm:$0xff] }
  0x33   : > { %943 = vmatmul.msk.f32.vlgmr.msra.gmra.mxu1 %vm319_vm0, %v337_v10  ;;  %314 = vst.msk [vmem:[#allocation2 + $0x18] sm:$0xff] %vm310_vm1, %v1247_v12  ;;  %1042 = vset.pattern.permute.xlu1 %v1248_v21  ;;  %v333_v42 = vld [vmem:[%s268_s18 + $0x8] sm:$0xff]  ;;  %s301_s24 = scalar_lea.vmem [#allocation11], %s1381_s20  ;;  %s960_s29 = sshll.u32 %s1235_s15, 5 }
  0x34   : > { %947 = vmatmul.msk.f32.vlgmr.msra.gmra.mxu3 %vm319_vm0, %v339_v11  ;;  %317 = vst.msk [vmem:[#allocation3 + $0x10] sm:$0xff] %vm310_vm1, %v1249_v22  ;;  %631 = vmatpush.msrb.mxu2 %v334_v39  ;;  %s783_s19 = scalar_lea.hbm %s1507_s3, %s960_s29  ;;  %s784_s21 = sshll.u32 %s301_s24, 4  ;;  %s785_s21 = int_to_ptr.vmem [resolvable:$true] %s784_s21 }
  0x35   : > { %315 = vst.msk [vmem:[#allocation3] sm:$0xff] %vm310_vm1, %v1249_v22  ;;  %654 = vmatpush.msrb.mxu3 %v335_v40  ;;  %585 = vmatpush.msrb.mxu0 %v332_v41  ;;  %s786_s22 = sshll.u32 %s783_s19, 4  ;;  %s771_s23 = scalar_lea.sflag [#allocation7], %s1378_s1  ;;  %s787_s22 = int_to_ptr.hbm [resolvable:$true] %s786_s22 }
  0x36   : > { %316 = vst.msk [vmem:[#allocation3 + $0x8] sm:$0xff] %vm310_vm1, %v1249_v22  ;;  %v1425_v23 = vld [vmem:[#allocation2] sm:$0xff]  ;;  %608 = vmatpush.msrb.mxu1 %v333_v42  ;;  %s1171_s6 = sshra.s32 %s787_s22, 4  ;;  %s1177_s10 = scalar_lea.hbm %s1507_s3, 64  ;;  %s1172_s6 = int_to_ptr.hbm [resolvable:$true] %s1171_s6 }
  0x37   : > { %318 = vst.msk [vmem:[#allocation3 + $0x18] sm:$0xff] %vm310_vm1, %v1249_v22  ;;  %s1173_s15 = scalar_lea.hbm %s1172_s6, 32  ;;  %p1178_p7 = scmp.lt.s32.totalorder %s1172_s6, %s1507_s3 }
  0x38   : > { %320 = vst.msk [vmem:[#allocation4] sm:$0xff] %vm319_vm0, %v1249_v22  ;;  %v446_v29 = vld [vmem:[#allocation2 + $0x8] sm:$0xff]  ;;  %p1174_p4 = scmp.ne.s32.totalorder %s1172_s6, %s1173_s15  ;;  %p1179_p8 = scmp.lt.s32.totalorder %s1177_s10, %s1173_s15 }
  0x39   : > { %321 = vst.msk [vmem:[#allocation4 + $0x8] sm:$0xff] %vm319_vm0, %v1249_v22  ;;  %v1435_v27 = vld [vmem:[#allocation2 + $0x10] sm:$0xff] }
  0x3a   : > { %322 = vst.msk [vmem:[#allocation4 + $0x10] sm:$0xff] %vm319_vm0, %v1249_v22  ;;  %v448_v35 = vld [vmem:[#allocation2 + $0x18] sm:$0xff]  ;;  %p1175_p5 = pnand %p1174_p4, %p1327_p9  ;;  %p1180_p10 = por %p1179_p8, %p1178_p7 }
  0x3b   : > { %323 = vst.msk [vmem:[#allocation4 + $0x18] sm:$0xff] %vm319_vm0, %v1249_v22  ;;  %v512_v7 = vld [vmem:[#allocation3 + $0x10] sm:$0xff] }
  0x3c   : > { %v510_v12 = vld [vmem:[#allocation3] sm:$0xff]  ;;  %p1176_p6 = pneg %p1175_p5 }
  0x3e   : > { %v513_v21 = vld [vmem:[#allocation3 + $0x18] sm:$0xff]  ;;  %p1181_p13 = pnand %p1180_p10, %p1176_p6 }
  0xaf   : > { %v1407_v13 = vpop.f32.mrf.mxu0 }
  0xb0   : > { %v450_v14 = vsel %vm449_vm2, %v1407_v13, -inf  ;;  %v1411_v15 = vpop.f32.mrf.mxu1 }
  0xb1   : > { %451 = vmax.xlane.f32.xlu1 %v450_v14  ;;  %v453_v18 = vsel %vm449_vm2, %v1411_v15, -inf }
  0xb5   : > { %v416_v16 = vpop.f32.mrf.mxu2 }
  0xb6   : > { %v456_v17 = vsel %vm449_vm2, %v416_v16, -inf }
  0xb7   : > { %457 = vmax.xlane.f32.xlu0 %v456_v17  ;;  %v442_v19 = vpop.f32.mrf.mxu3 }
  0xb8   : > { %v459_v20 = vsel %vm449_vm2, %v442_v19, -inf }
  0xb9   : > { %454 = vmax.xlane.f32.xlu1 %v453_v18 }
  0xbf   : > { %460 = vmax.xlane.f32.xlu0 %v459_v20  ;;  %v511_v20 = vld [vmem:[#allocation3 + $0x8] sm:$0xff] }
 0x124   : > { %v452_v24 = vpop.xlane.xlu1 %451 }
 0x125   : > { %v1428_v25 = vmax.f32 %v1425_v23, %v452_v24 }
 0x127   : > { %v466_v26 = vsub.f32 %v1425_v23, %v1428_v25  ;;  %667 = vst.msk [vmem:[#allocation2] sm:$0xff] %vm310_vm1, %v1428_v25  ;;  %480 = vperm.xlu0 %1041, %v1428_v25  }
 0x129   : > { %v470_v63 = vmul.f32 1.442695, %v466_v26 }
 0x12a   : > { %v458_v28 = vpop.xlane.xlu0 %457 }
 0x12b   : > { %v464_v30 = vmax.f32 %v1435_v27, %v458_v28 }
 0x12c   : > { %v455_v31 = vpop.xlane.xlu1 %454 }
 0x12d   : > { %v468_v32 = vsub.f32 %v1435_v27, %v464_v30  ;;  %669 = vst.msk [vmem:[#allocation2 + $0x10] sm:$0xff] %vm310_vm1, %v464_v30  ;;  %v463_v33 = vmax.f32 %v446_v29, %v455_v31  ;;  %490 = vperm.xlu2 %1040, %v464_v30  }
 0x12f   : > { %v467_v34 = vsub.f32 %v446_v29, %v463_v33  ;;  %668 = vst.msk [vmem:[#allocation2 + $0x8] sm:$0xff] %vm310_vm1, %v463_v33  ;;  %485 = vperm.xlu1 %1042, %v463_v33   ;;  %v474_v1 = vmul.f32 1.442695, %v468_v32 }
 0x131   : > { %v472_v0 = vmul.f32 1.442695, %v467_v34 }
 0x132   : > { %v461_v36 = vpop.xlane.xlu0 %460 }
 0x133   : > { %v465_v37 = vmax.f32 %v448_v35, %v461_v36 }
 0x135   : > { %v469_v38 = vsub.f32 %v448_v35, %v465_v37  ;;  %670 = vst.msk [vmem:[#allocation2 + $0x18] sm:$0xff] %vm310_vm1, %v465_v37  ;;  %495 = vperm.xlu2 %1040, %v465_v37   ;;  %v539_v35 = vld [vmem:[#allocation4] sm:$0xff] }
 0x137   : > { %v476_v4 = vmul.f32 1.442695, %v469_v38 }
 0x187   : > { %v491_v43 = vpop.permute.xlu2 %490 }
 0x188   : > { %v500_v44 = vsub.f32 %v416_v16, %v491_v43 }
 0x18a   : > { %v506_v45 = vmul.f32 1.442695, %v500_v44 }
 0x18c   : > { %1043 = vpow2.f32 %v506_v45 }
 0x18f   : > { %v496_v46 = vpop.permute.xlu2 %495 }
 0x190   : > { %v501_v47 = vsub.f32 %v442_v19, %v496_v46  ;;  %v541_v46 = vld [vmem:[#allocation4 + $0x10] sm:$0xff] }
 0x192   : > { %v1044_v48 = vpop.eup %1043  ;;  %v508_v49 = vmul.f32 1.442695, %v501_v47 }
 0x193   : > { %950 = vmatmul.msk.f32.vlgmr.msrb.gmra.mxu2 %vm449_vm2, %v1044_v48  ;;  %v524_v50 = vsel %vm449_vm2, %v1044_v48, 0.0 }
 0x194   : > { %1045 = vpow2.f32 %v508_v49  ;;  %525 = vadd.xlane.f32.xlu0 %v524_v50 }
 0x199   : > { %v481_v51 = vpop.permute.xlu0 %480 }
 0x19a   : > { %v1046_v52 = vpop.eup %1045  ;;  %v498_v53 = vsub.f32 %v1407_v13, %v481_v51 }
 0x19b   : > { %951 = vmatmul.msk.f32.vlgmr.msrb.gmra.mxu3 %vm449_vm2, %v1046_v52  ;;  %v527_v62 = vsel %vm449_vm2, %v1046_v52, 0.0 }
 0x19c   : > { %v502_v54 = vmul.f32 1.442695, %v498_v53 }
 0x19e   : > { %1047 = vpow2.f32 %v502_v54 }
 0x1a1   : > { %v486_v55 = vpop.permute.xlu1 %485 }
 0x1a2   : > { %v499_v56 = vsub.f32 %v1411_v15, %v486_v55 }
 0x1a4   : > { %v1048_v57 = vpop.eup %1047  ;;  %v504_v58 = vmul.f32 1.442695, %v499_v56 }
 0x1a5   : > { %948 = vmatmul.msk.f32.vlgmr.msrb.gmra.mxu0 %vm449_vm2, %v1048_v57  ;;  %v518_v59 = vsel %vm449_vm2, %v1048_v57, 0.0 }
 0x1a6   : > { %1049 = vpow2.f32 %v504_v58  ;;  %519 = vadd.xlane.f32.xlu2 %v518_v59 }
 0x1a7   : > { %1051 = vpow2.f32 %v470_v63 }
 0x1a8   : > { %1053 = vpow2.f32 %v472_v0  ;;  %v540_v0 = vld [vmem:[#allocation4 + $0x8] sm:$0xff] }
 0x1a9   : > { %1055 = vpow2.f32 %v474_v1  ;;  %v542_v1 = vld [vmem:[#allocation4 + $0x18] sm:$0xff] }
 0x1aa   : > { %1057 = vpow2.f32 %v476_v4 }
 0x1ac   : > { %v1050_v60 = vpop.eup %1049 }
 0x1ad   : > { %949 = vmatmul.msk.f32.vlgmr.msrb.gmra.mxu1 %vm449_vm2, %v1050_v60  ;;  %v521_v61 = vsel %vm449_vm2, %v1050_v60, 0.0  ;;  %v1052_v2 = vpop.eup %1051 }
 0x1ae   : > { %522 = vadd.xlane.f32.xlu1 %v521_v61  ;;  %528 = vadd.xlane.f32.xlu2 %v527_v62  ;;  %v1054_v3 = vpop.eup %1053  ;;  %v514_v14 = vmul.f32 %v1052_v2, %v510_v12 }
 0x1af   : > { %v1056_v5 = vpop.eup %1055  ;;  %v515_v25 = vmul.f32 %v1054_v3, %v511_v20 }
 0x1b0   : > { %v1058_v6 = vpop.eup %1057  ;;  %v516_v8 = vmul.f32 %v1056_v5, %v512_v7 }
 0x1b1   : > { %v517_v26 = vmul.f32 %v1058_v6, %v513_v21 }
 0x1c6   : > { %545 = vperm.xlu2 %1040, %v1052_v2  }
 0x1c7   : > { %550 = vperm.xlu1 %1042, %v1054_v3  }
 0x1ce   : > { %555 = vperm.xlu2 %1040, %v1056_v5  }
 0x1d6   : > { %560 = vperm.xlu2 %1040, %v1058_v6  }
 0x207   : > { %v526_v9 = vpop.xlane.xlu0 %525 }
 0x208   : > { %v532_v10 = vadd.f32 %v526_v9, %v516_v8 }
 0x20a   : > { %537 = vst.msk [vmem:[#allocation3 + $0x10] sm:$0xff] %vm310_vm1, %v532_v10 }
 0x211   : > { %v676_v11 = vld [vmem:[#allocation3 + $0x10] sm:$0xff] }
 0x212   : > { %1059 = vrcp.f32 %v676_v11  ;;  %v719_v19 = vand.u32 2147483648, %v676_v11  ;;  %v717_v23 = vand.u32 2147483647, %v676_v11  ;;  %vm713_vm4 = vweird.f32 %v676_v11 }
 0x214   : > { %v720_v27 = vor.u32 1.1754944e-38, %v719_v19  ;;  %vm718_vm6 = vcmp.eq.f32.partialorder %v717_v23, 8.507059e+37 }
 0x216   : > { %v633_v55 = vpop.f32.mrf.mxu2 }
 0x218   : > { %v1060_v13 = vpop.eup %1059 }
 0x219   : > { %v520_v15 = vpop.xlane.xlu2 %519  ;;  %v709_v16 = vmul.f32 %v1060_v13, %v676_v11  ;;  %vm714_vm3 = vweird.f32 %v1060_v13 }
 0x21a   : > { %v530_v17 = vadd.f32 %v520_v15, %v514_v14  ;;  %vm715_vm5 = vmor %vm713_vm4, %vm714_vm3 }
 0x21b   : > { %v710_v18 = vsub.f32 1.0, %v709_v16 }
 0x21c   : > { %535 = vst.msk [vmem:[#allocation3] sm:$0xff] %vm310_vm1, %v530_v17 }
 0x21d   : > { %v711_v22 = vmul.f32 %v1060_v13, %v710_v18 }
 0x21e   : > { %v656_v11 = vpop.f32.mrf.mxu3 }
 0x21f   : > { %v712_v24 = vadd.f32 %v1060_v13, %v711_v22 }
 0x221   : > { %v523_v28 = vpop.xlane.xlu1 %522  ;;  %v529_v29 = vpop.xlane.xlu2 %528  ;;  %v716_v30 = vsel %vm715_vm5, %v1060_v13, %v712_v24 }
 0x222   : > { %v531_v31 = vadd.f32 %v523_v28, %v515_v25  ;;  %v533_v32 = vadd.f32 %v529_v29, %v517_v26  ;;  %v721_v33 = vsel %vm718_vm6, %v720_v27, %v716_v30  ;;  %v587_v39 = vpop.f32.mrf.mxu0 }
 0x223   : > { %754 = vperm.xlu1 %1042, %v721_v33   ;;  %v674_v34 = vld [vmem:[#allocation3] sm:$0xff] }
 0x224   : > { %536 = vst.msk [vmem:[#allocation3 + $0x8] sm:$0xff] %vm310_vm1, %v531_v31  ;;  %1061 = vrcp.f32 %v674_v34  ;;  %v689_v45 = vand.u32 2147483648, %v674_v34  ;;  %v687_v48 = vand.u32 2147483647, %v674_v34  ;;  %vm683_vm8 = vweird.f32 %v674_v34 }
 0x225   : > { %538 = vst.msk [vmem:[#allocation3 + $0x18] sm:$0xff] %vm310_vm1, %v533_v32 }
 0x226   : > { %v690_v53 = vor.u32 1.1754944e-38, %v689_v45  ;;  %vm688_vm10 = vcmp.eq.f32.partialorder %v687_v48, 8.507059e+37 }
 0x229   : > { %v546_v36 = vpop.permute.xlu2 %545 }
 0x22a   : > { %v1062_v37 = vpop.eup %1061  ;;  %v563_v38 = vmul.f32 %v546_v36, %v539_v35  ;;  %v610_v12 = vpop.f32.mrf.mxu1 }
 0x22b   : > { %v679_v40 = vmul.f32 %v1062_v37, %v674_v34  ;;  %v675_v41 = vld [vmem:[#allocation3 + $0x8] sm:$0xff]  ;;  %vm684_vm7 = vweird.f32 %v1062_v37 }
 0x22c   : > { %v659_v42 = vadd.f32 %v587_v39, %v563_v38  ;;  %1063 = vrcp.f32 %v675_v41  ;;  %v677_v43 = vld [vmem:[#allocation3 + $0x18] sm:$0xff]  ;;  %vm685_vm9 = vmor %vm683_vm8, %vm684_vm7  ;;  %v704_v62 = vand.u32 2147483648, %v675_v41  ;;  %v702_v3 = vand.u32 2147483647, %v675_v41 }
 0x22d   : > { %v680_v44 = vsub.f32 1.0, %v679_v40  ;;  %1065 = vrcp.f32 %v677_v43  ;;  %vm698_vm12 = vweird.f32 %v675_v41  ;;  %v734_v18 = vand.u32 2147483648, %v677_v43 }
 0x22e   : > { %663 = vst.msk [vmem:[#allocation4] sm:$0xff] %vm319_vm0, %v659_v42  ;;  %v705_v10 = vor.u32 1.1754944e-38, %v704_v62  ;;  %vm703_vm14 = vcmp.eq.f32.partialorder %v702_v3, 8.507059e+37  ;;  %vm728_vm1 = vweird.f32 %v677_v43  ;;  %v732_v19 = vand.u32 2147483647, %v677_v43 }
 0x22f   : > { %v681_v47 = vmul.f32 %v1062_v37, %v680_v44  ;;  %v735_v21 = vor.u32 1.1754944e-38, %v734_v18 }
 0x230   : > { %vm733_vm3 = vcmp.eq.f32.partialorder %v732_v19, 8.507059e+37 }
 0x231   : > { %v556_v49 = vpop.permute.xlu2 %555  ;;  %v682_v50 = vadd.f32 %v1062_v37, %v681_v47 }
 0x232   : > { %v1064_v51 = vpop.eup %1063  ;;  %v565_v52 = vmul.f32 %v556_v49, %v541_v46 }
 0x233   : > { %v1066_v54 = vpop.eup %1065  ;;  %v686_v56 = vsel %vm685_vm9, %v1062_v37, %v682_v50  ;;  %v694_v57 = vmul.f32 %v1064_v51, %v675_v41  ;;  %vm699_vm11 = vweird.f32 %v1064_v51 }
 0x234   : > { %v661_v58 = vadd.f32 %v633_v55, %v565_v52  ;;  %v691_v59 = vsel %vm688_vm10, %v690_v53, %v686_v56  ;;  %v724_v60 = vmul.f32 %v1066_v54, %v677_v43  ;;  %vm700_vm13 = vmor %vm698_vm12, %vm699_vm11  ;;  %vm729_vm15 = vweird.f32 %v1066_v54 }
 0x235   : > { %744 = vperm.xlu0 %1041, %v691_v59   ;;  %v695_v61 = vsub.f32 1.0, %v694_v57  ;;  %vm730_vm2 = vmor %vm728_vm1, %vm729_vm15  ;;  %v738_v32 = vld [vmem:[#allocation4] sm:$0xff] }
 0x236   : > { %665 = vst.msk [vmem:[#allocation4 + $0x10] sm:$0xff] %vm319_vm0, %v661_v58  ;;  %v725_v63 = vsub.f32 1.0, %v724_v60 }
 0x237   : > { %v696_v2 = vmul.f32 %v1064_v51, %v695_v61 }
 0x238   : > { %v726_v7 = vmul.f32 %v1066_v54, %v725_v63 }
 0x239   : > { %v551_v4 = vpop.permute.xlu1 %550  ;;  %v561_v5 = vpop.permute.xlu2 %560  ;;  %v697_v6 = vadd.f32 %v1064_v51, %v696_v2 }
 0x23a   : > { %v564_v8 = vmul.f32 %v551_v4, %v540_v0  ;;  %v566_v9 = vmul.f32 %v561_v5, %v542_v1  ;;  %v727_v17 = vadd.f32 %v1066_v54, %v726_v7 }
 0x23b   : > { %v701_v13 = vsel %vm700_vm13, %v1064_v51, %v697_v6 }
 0x23c   : > { %v660_v14 = vadd.f32 %v610_v12, %v564_v8  ;;  %v662_v15 = vadd.f32 %v656_v11, %v566_v9  ;;  %v706_v16 = vsel %vm703_vm14, %v705_v10, %v701_v13  ;;  %v731_v20 = vsel %vm730_vm2, %v1066_v54, %v727_v17 }
 0x23d   : > { %749 = vperm.xlu2 %1040, %v706_v16   ;;  %v736_v22 = vsel %vm733_vm3, %v735_v21, %v731_v20  ;;  %v740_v24 = vld [vmem:[#allocation4 + $0x10] sm:$0xff] }
 0x23e   : > { %664 = vst.msk [vmem:[#allocation4 + $0x8] sm:$0xff] %vm319_vm0, %v660_v14 }
 0x23f   : > { %666 = vst.msk [vmem:[#allocation4 + $0x18] sm:$0xff] %vm319_vm0, %v662_v15 }
 0x245   : > { %759 = vperm.xlu2 %1040, %v736_v22   ;;  %v739_v26 = vld [vmem:[#allocation4 + $0x8] sm:$0xff] }
 0x246   : > { %v741_v29 = vld [vmem:[#allocation4 + $0x18] sm:$0xff] }
 0x295   : > { %v755_v23 = vpop.permute.xlu1 %754 }
 0x296   : > { %v764_v25 = vmul.f32 %v755_v23, %v740_v24 }
 0x297   : > { %v750_v27 = vpop.permute.xlu2 %749 }
 0x298   : > { %768 = vst.msk [vmem:[%s301_s24 + $0x10] sm:$0xff] %vm319_vm0, %v764_v25  ;;  %v763_v28 = vmul.f32 %v750_v27, %v739_v26 }
 0x29a   : > { %767 = vst.msk [vmem:[%s301_s24 + $0x8] sm:$0xff] %vm319_vm0, %v763_v28 }
 0x29f   : > { %v760_v30 = vpop.permute.xlu2 %759 }
 0x2a0   : > { %v765_v31 = vmul.f32 %v760_v30, %v741_v29 }
 0x2a2   : > { %769 = vst.msk [vmem:[%s301_s24 + $0x18] sm:$0xff] %vm319_vm0, %v765_v31 }
 0x2a7   : > { %v745_v33 = vpop.permute.xlu0 %744 }
 0x2a8   : > { %v762_v34 = vmul.f32 %v745_v33, %v738_v32 }
 0x2aa   : > { %766 = vst.msk [vmem:[%s301_s24] sm:$0xff] %vm319_vm0, %v762_v34 }
 0x2ab   : > { %1184 = shalt.err (!%p1181_p13)
}
 0x2ac   : > { %s1250_s11 = smov 128   ;;  %s1251_s1 = smov 8  }
 0x2ad   : > { %967 = dma.vmem_to_hbm [thread:$0]  (%p1327_p9), %s785_s21, 512, %s787_s22, %s771_s23, %s1250_s11, %s1250_s11, %s1251_s1  }
 0x2ae PF: > { %s1526_s20 = sld [smem:[#allocation17_spill]]  ;;  %s801_s28 = sand.u32 1, %s1223_s12  }
 0x2af   : > { %p980_p0 = pnand %p925_p12, %p1334_p11  ;;  %s802_s16 = scalar_lea.sflag [#allocation7], %s801_s28 }
 0x2b1   : > { %p981_p1 = pneg %p980_p0 }
 0x2b3   : > { %1218 = dma.done.wait (%p981_p1), %s802_s16, 512  }
 0x2b4   : > { %1220 = vsyncadd (%p981_p1), %s802_s16, 4294966784  ;;  %s22_s17 = sadd.s32 1, %s1526_s20   ;;  %s1527_s14 = sld [smem:[#allocation15_spill]] }
 0x2b5   : > { %p19_p2 = scmp.ge.s32.totalorder %s22_s17, 4   ;;  %s1528_s26 = sld [smem:[#allocation19_spill]] }
 0x2b6   : > { %s1529_s15 = sld [smem:[#allocation16_spill]]  ;;  %s1531_s12 = smov %s1227_s13 }
 0x2b7   : > { %s1530_s16 = sld [smem:[#allocation18_spill]]  ;;  %21 = sbr.rel (!%p19_p2) target bundleno = 10 (0xa), region = 109 }
 0x2ba   : > { %s1532_s13 = smov %s1527_s14 }
 0x2bb   : > { %s1533_s14 = smov %s1528_s26 }
 0x2bc   :  { %808 = vsyncpa [#allocation6], 1 }
 0x2bd   :  { %810 = vsyncpa [#allocation6 + $0x1], 1 }
 0x2be   :  { %811 = vsyncpa [#allocation9], 1 }
 0x2bf   :  { %813 = vsyncpa [#allocation9 + $0x1], 1 }
 0x2c0   :  { %814 = vsyncpa [#allocation7], 1 }
 0x2c1   :  { %816 = vsyncpa [#allocation7 + $0x1], 1 }

</bundles_post_ra>
